<compile_context>
chip_gen: v5e
topology: v5e:2x2
jax: 0.10.0
libtpu: 0.0.40
codegen_flags: <defaults>
</compile_context>

<pallas_src>
import jax
import jax.numpy as jnp
import numpy as np
from jax import lax
from jax.experimental import pallas as pl
from jax.experimental.pallas import tpu as pltpu


_LANE_CHOICES = (2048, 1024, 512, 256, 128)   # preferred lane widths (mult. of 128)


def _device_profile():
    """Return (num_parallel_slabs, block_elems, vmem_limit_bytes) for the local chip."""
    try:
        kind = jax.devices()[0].device_kind.lower()
    except Exception:
        kind = ""
    if "tpu" not in kind:
        # Unknown backend: conservative defaults.
        return 1, 1024 * 1024, 32 * 1024 * 1024
    if ("v7" in kind) or ("7x" in kind) or ("tpu7" in kind):
        # v7x: 2 TensorCores, 64 MiB VMEM/TC -> ~8 MiB f32 input tiles, 48 MiB
        # scoped limit leaves headroom for Pallas internal scratch.
        # TODO(synk): try pltpu.CORE_PARALLEL / pl.core_map on the slab axis and
        # confirm the 2-TC split in an xprof trace.
        return 2, 2 * 1024 * 1024, 48 * 1024 * 1024
    # v5e / v6e: single TC, 128 MiB physical VMEM -> bigger tiles, higher limit.
    return 1, 4 * 1024 * 1024, 96 * 1024 * 1024


def _make_kernel(*, total_elems, lanes, block_rows, blocks_per_slab, num_slabs,
                 alpha, margin, tau, sublane_fold):
    alpha = float(alpha)
    beta = 1.0 - alpha
    margin = float(margin)
    tau = float(tau)
    C = int(lanes)
    tm = int(block_rows)
    bps = int(blocks_per_slab)
    n_full_rows = total_elems // C      # rows that are entirely valid
    rem = total_elems % C               # valid lanes in the single partial row
    # True iff every (slab, step) block is fully covered by valid data.
    all_clean = (rem == 0) and (num_slabs * bps * tm == n_full_rows)

    def kernel(logits_ref, gt_ref, out_ref, acc_ref):
        p = pl.program_id(0)
        j = pl.program_id(1)

        @pl.when(j == 0)
        def _init():
            acc_ref[...] = jnp.zeros_like(acc_ref)

        x = logits_ref[...].astype(jnp.float32)
        y = gt_ref[...].astype(jnp.float32)

        # --- BCE with logits on (x * tau), numerically stable form ---
        z = x if tau == 1.0 else x * tau
        bce = jnp.maximum(z, 0.0) - z * y + jnp.log1p(jnp.exp(-jnp.abs(z)))

        # --- hinge_embedding_loss(x, t = 2*y - 1, margin), ATen semantics ---
        #   (t != 1) * clamp(margin - x, min=0) + (t != -1) * x
        # expressed directly on y (t != 1 <=> y != 1 ; t != -1 <=> y != 0).
        hinge = (jnp.where(y != 1.0, jnp.maximum(margin - x, 0.0), 0.0)
                 + jnp.where(y != 0.0, x, 0.0))

        contrib = alpha * bce + beta * hinge

        def accumulate(c):
            if sublane_fold:
                # Fold block rows into the small (8, C) running sum: keeps the
                # accumulator tiny (no (tm, C) load/store traffic per step).
                acc_ref[...] += c.reshape(tm // 8, 8, C).sum(axis=0)
            else:
                acc_ref[...] += c

        if all_clean:
            accumulate(contrib)
        else:
            blk = p * bps + j                  # logical (un-clamped) block index
            row0 = blk * tm
            is_clean = (row0 + tm) <= n_full_rows

            @pl.when(is_clean)
            def _interior():
                accumulate(contrib)

            @pl.when(jnp.logical_not(is_clean))
            def _tail():
                rows = lax.broadcasted_iota(jnp.int32, (tm, 1), 0) + row0
                if rem == 0:
                    valid = rows < n_full_rows
                else:
                    cols = lax.broadcasted_iota(jnp.int32, (1, C), 1)
                    valid = (rows < n_full_rows) | ((rows == n_full_rows) & (cols < rem))
                accumulate(jnp.where(valid, contrib, 0.0))

        @pl.when(j == pl.num_programs(1) - 1)
        def _finalize():
            total = jnp.sum(acc_ref[...])
            out_ref[...] = jnp.full(out_ref.shape, total, dtype=out_ref.dtype)

    return kernel


def hsig_loss(logits, gt, *, alpha=0.95, min_margin=1.0, temperature=1.0):
    assert logits.shape == gt.shape, "logits and ground truth must have the same shape."
    assert 0.0 <= alpha <= 1.0, "alpha must be in [0, 1]"
    T = int(np.prod(logits.shape))
    assert T > 0

    P, block_elems, vmem_limit = _device_profile()

    # ---- lane-dense slab layout, independent of the original last dim ----
    C = next((c for c in _LANE_CHOICES if T % c == 0), 128)
    pad = (-T) % C
    x = logits.reshape(-1)
    y = gt.reshape(-1)
    if pad:  # rare: T not a multiple of 128; padded lanes are masked in-kernel.
        x = jnp.pad(x, (0, pad))
        y = jnp.pad(y, (0, pad))
    R = (T + pad) // C
    x = x.reshape(R, C)
    y = y.reshape(R, C)

    # ---- block / grid geometry (tm a multiple of 8 whenever possible) ----
    tm_target = max(8, block_elems // C)       # power-of-two >= 8 -> multiple of 8
    if R >= tm_target:
        tm = tm_target
    elif R % 8 == 0 or R < 8:
        tm = R                                 # single block == full row extent
    else:
        tm = (R // 8) * 8                      # last block overshoots rows; masked
    n_blocks = -(-R // tm)

    if P > 1:
        if n_blocks < P:
            P = 1                              # nothing to split; avoid duplicate reads
        elif n_blocks % P != 0:
            # Rebalance so slabs do equal work and no clamped duplicate block
            # needs to be re-read; fall back to clamping if it doesn't work out.
            tm_try = max(8, ((-(-R // (n_blocks + 1)) + 7) // 8) * 8)
            if (-(-R // tm_try)) % P == 0:
                tm = tm_try
                n_blocks = -(-R // tm)
    bps = -(-n_blocks // P)                    # blocks per parallel slab

    sublane_fold = (tm % 8 == 0)
    acc_rows = 8 if sublane_fold else tm

    kernel = _make_kernel(total_elems=T, lanes=C, block_rows=tm,
                          blocks_per_slab=bps, num_slabs=P,
                          alpha=alpha, margin=min_margin, tau=temperature,
                          sublane_fold=sublane_fold)

    clamp = (P * bps != n_blocks)

    def in_map(p_idx, j_idx):
        blk = p_idx * bps + j_idx
        if clamp:
            # Keep the block index in range; duplicate reads contribute zero
            # (they fail the in-kernel `is_clean` test and are fully masked).
            blk = jnp.minimum(blk, n_blocks - 1)
        return (blk, 0)

    partials = pl.pallas_call(
        kernel,
        out_shape=jax.ShapeDtypeStruct((P, 8, 128), jnp.float32),
        grid_spec=pltpu.PrefetchScalarGridSpec(
            num_scalar_prefetch=0,
            grid=(P, bps),
            in_specs=[
                pl.BlockSpec((tm, C), in_map),
                pl.BlockSpec((tm, C), in_map),
            ],
            out_specs=pl.BlockSpec((1, 8, 128), lambda p_idx, j_idx: (p_idx, 0, 0)),
            scratch_shapes=[pltpu.VMEM((acc_rows, C), jnp.float32)],
        ),
        compiler_params=pltpu.CompilerParams(
            dimension_semantics=("parallel", "arbitrary"),
            vmem_limit_bytes=vmem_limit,
        ),
    )(x, y)

    # Tiny final combine of the per-slab partial sums (plain JAX).
    return jnp.sum(partials[:, 0, 0]) / T


def hsig_loss_ref(logits, gt, *, alpha=0.95, min_margin=1.0, temperature=1.0):
    """Pure-JAX reference mirroring the PyTorch module."""
    x = logits.astype(jnp.float32)
    y = gt.astype(jnp.float32)
    z = x * temperature
    bce = jnp.maximum(z, 0.0) - z * y + jnp.log1p(jnp.exp(-jnp.abs(z)))
    t = 2.0 * y - 1.0
    hinge = (jnp.where(t != 1.0, jnp.maximum(min_margin - x, 0.0), 0.0)
             + jnp.where(t != -1.0, x, 0.0))
    return alpha * bce.mean() + (1.0 - alpha) * hinge.mean()


if __name__ == "__main__":
    key = jax.random.PRNGKey(0)
    k1, k2, k3, k4 = jax.random.split(key, 4)

    # Main example: small NCHW-style logits / binary ground truth.
    logits = jax.random.normal(k1, (2, 4, 16, 16), dtype=jnp.float32) * 2.0
    gt = jax.random.bernoulli(k2, 0.5, (2, 4, 16, 16)).astype(jnp.float32)

    out = jax.block_until_ready(
        hsig_loss(logits, gt, alpha=0.95, min_margin=1.0, temperature=1.0))
    ref = jax.block_until_ready(
        hsig_loss_ref(logits, gt, alpha=0.95, min_margin=1.0, temperature=1.0))
    assert np.allclose(np.asarray(out), np.asarray(ref), rtol=1e-5, atol=1e-5), (out, ref)

    # Second check: awkward (non-128-multiple) shape exercising the pad/mask path
    # and a non-trivial temperature / alpha / margin.
    logits2 = jax.random.normal(k3, (3, 5, 7), dtype=jnp.float32) * 1.5
    gt2 = jax.random.bernoulli(k4, 0.5, (3, 5, 7)).astype(jnp.float32)
    out2 = jax.block_until_ready(
        hsig_loss(logits2, gt2, alpha=0.8, min_margin=0.5, temperature=2.0))
    ref2 = jax.block_until_ready(
        hsig_loss_ref(logits2, gt2, alpha=0.8, min_margin=0.5, temperature=2.0))
    assert np.allclose(np.asarray(out2), np.asarray(ref2), rtol=1e-5, atol=1e-5), (out2, ref2)

    print("KERNEL_OK")
</pallas_src>

<mosaic_0001>
module attributes {stable_mosaic.version = 11 : i64} {
  func.func @kernel(%arg0: i32, %arg1: i32, %arg2: memref<1x2048xf32, #tpu.memory_space<vmem>>, %arg3: memref<1x2048xf32, #tpu.memory_space<vmem>>, %arg4: memref<1x8x128xf32, #tpu.memory_space<vmem>>, %arg5: memref<1x2048xf32, #tpu.memory_space<vmem>>) attributes {dimension_semantics = [#tpu.dimension_semantics<parallel>, #tpu.dimension_semantics<arbitrary>], iteration_bounds = array<i64: 1, 1>, scalar_prefetch = 0 : i64, scratch_operands = 1 : i64, tpu.core_type = #tpu.core_type<tc>, window_params = [{transform_indices = @transform_0, window_bounds = array<i64: 1, 2048>}, {transform_indices = @transform_1, window_bounds = array<i64: 1, 2048>}, {transform_indices = @transform_2, window_bounds = array<i64: 1, 8, 128>}]} {
    %c0_i32 = arith.constant 0 : i32
    %0 = arith.cmpi eq, %arg1, %c0_i32 : i32
    %1 = arith.extui %0 : i1 to i32
    %c0_i32_0 = arith.constant 0 : i32
    %2 = arith.cmpi ne, %1, %c0_i32_0 : i32
    scf.if %2 {
      %cst_19 = arith.constant 0.000000e+00 : f32
      %39 = vector.broadcast %cst_19 : f32 to vector<1x2048xf32>
      %c0_20 = arith.constant 0 : index
      %c0_21 = arith.constant 0 : index
      %40 = vector.load %arg5[%c0_20, %c0_21] : memref<1x2048xf32, #tpu.memory_space<vmem>>, vector<1x2048xf32>
      tpu.vector_store %arg5[%c0_20, %c0_21], %39 {strides = array<i32>} : memref<1x2048xf32, #tpu.memory_space<vmem>>, vector<1x2048xf32>,
    } else {
    }
    %c0 = arith.constant 0 : index
    %c0_1 = arith.constant 0 : index
    %3 = vector.load %arg2[%c0, %c0_1] : memref<1x2048xf32, #tpu.memory_space<vmem>>, vector<1x2048xf32>
    %c0_2 = arith.constant 0 : index
    %c0_3 = arith.constant 0 : index
    %4 = vector.load %arg3[%c0_2, %c0_3] : memref<1x2048xf32, #tpu.memory_space<vmem>>, vector<1x2048xf32>
    %cst = arith.constant 0.000000e+00 : f32
    %5 = vector.broadcast %cst : f32 to vector<1x2048xf32>
    %6 = arith.maximumf %3, %5 : vector<1x2048xf32>
    %7 = arith.mulf %3, %4 : vector<1x2048xf32>
    %8 = arith.subf %6, %7 : vector<1x2048xf32>
    %9 = math.absf %3 : vector<1x2048xf32>
    %cst_4 = arith.constant 0.000000e+00 : f32
    %10 = vector.broadcast %cst_4 : f32 to vector<1x2048xf32>
    %11 = arith.subf %10, %9 : vector<1x2048xf32>
    %12 = math.exp %11 : vector<1x2048xf32>
    %13 = math.log1p %12 : vector<1x2048xf32>
    %14 = arith.addf %8, %13 : vector<1x2048xf32>
    %cst_5 = arith.constant 1.000000e+00 : f32
    %15 = vector.broadcast %cst_5 : f32 to vector<1x2048xf32>
    %16 = arith.cmpf one, %4, %15 : vector<1x2048xf32>
    %cst_6 = arith.constant 1.000000e+00 : f32
    %17 = vector.broadcast %cst_6 : f32 to vector<1x2048xf32>
    %18 = arith.subf %17, %3 : vector<1x2048xf32>
    %cst_7 = arith.constant 0.000000e+00 : f32
    %19 = vector.broadcast %cst_7 : f32 to vector<1x2048xf32>
    %20 = arith.maximumf %18, %19 : vector<1x2048xf32>
    %cst_8 = arith.constant 0.000000e+00 : f32
    %21 = vector.broadcast %cst_8 : f32 to vector<1x2048xf32>
    %22 = arith.select %16, %20, %21 : vector<1x2048xi1>, vector<1x2048xf32>
    %cst_9 = arith.constant 0.000000e+00 : f32
    %23 = vector.broadcast %cst_9 : f32 to vector<1x2048xf32>
    %24 = arith.cmpf one, %4, %23 : vector<1x2048xf32>
    %cst_10 = arith.constant 0.000000e+00 : f32
    %25 = vector.broadcast %cst_10 : f32 to vector<1x2048xf32>
    %26 = arith.select %24, %3, %25 : vector<1x2048xi1>, vector<1x2048xf32>
    %27 = arith.addf %22, %26 : vector<1x2048xf32>
    %cst_11 = arith.constant 0.949999988 : f32
    %28 = vector.broadcast %cst_11 : f32 to vector<1x2048xf32>
    %29 = arith.mulf %28, %14 : vector<1x2048xf32>
    %cst_12 = arith.constant 5.000000e-02 : f32
    %30 = vector.broadcast %cst_12 : f32 to vector<1x2048xf32>
    %31 = arith.mulf %30, %27 : vector<1x2048xf32>
    %32 = arith.addf %29, %31 : vector<1x2048xf32>
    %c0_13 = arith.constant 0 : index
    %c0_14 = arith.constant 0 : index
    %33 = vector.load %arg5[%c0_13, %c0_14] : memref<1x2048xf32, #tpu.memory_space<vmem>>, vector<1x2048xf32>
    %34 = arith.addf %33, %32 : vector<1x2048xf32>
    %c0_15 = arith.constant 0 : index
    %c0_16 = arith.constant 0 : index
    %35 = vector.load %arg5[%c0_15, %c0_16] : memref<1x2048xf32, #tpu.memory_space<vmem>>, vector<1x2048xf32>
    tpu.vector_store %arg5[%c0_15, %c0_16], %34 {strides = array<i32>} : memref<1x2048xf32, #tpu.memory_space<vmem>>, vector<1x2048xf32>,
    %c0_i32_17 = arith.constant 0 : i32
    %36 = arith.cmpi eq, %arg1, %c0_i32_17 : i32
    %37 = arith.extui %36 : i1 to i32
    %c0_i32_18 = arith.constant 0 : i32
    %38 = arith.cmpi ne, %37, %c0_i32_18 : i32
    scf.if %38 {
      %c0_19 = arith.constant 0 : index
      %c0_20 = arith.constant 0 : index
      %39 = vector.load %arg5[%c0_19, %c0_20] : memref<1x2048xf32, #tpu.memory_space<vmem>>, vector<1x2048xf32>
      %40 = vector.shape_cast %39 : vector<1x2048xf32> to vector<1x1x2048xf32>
      %cst_21 = arith.constant dense<0.000000e+00> : vector<1xf32>
      %41 = vector.multi_reduction <add>, %40, %cst_21 [1, 2] : vector<1x1x2048xf32> to vector<1xf32>
      %42 = vector.shape_cast %41 : vector<1xf32> to vector<1x1x1xf32>
      %43 = vector.extract %42[0, 0, 0] : f32 from vector<1x1x1xf32>
      %44 = vector.broadcast %43 : f32 to vector<1x8x128xf32>
      %c0_22 = arith.constant 0 : index
      %c0_23 = arith.constant 0 : index
      %c0_24 = arith.constant 0 : index
      %45 = vector.load %arg4[%c0_22, %c0_23, %c0_24] : memref<1x8x128xf32, #tpu.memory_space<vmem>>, vector<1x8x128xf32>
      tpu.vector_store %arg4[%c0_22, %c0_23, %c0_24], %44 {strides = array<i32>} : memref<1x8x128xf32, #tpu.memory_space<vmem>>, vector<1x8x128xf32>,
    } else {
    }
    return
  }
  func.func @transform_0(%arg0: i32, %arg1: i32) -> (i32, i32) {
    %c1_i32 = arith.constant 1 : i32
    %0 = arith.muli %arg0, %c1_i32 : i32
    %1 = arith.addi %0, %arg1 : i32
    %c0_i32 = arith.constant 0 : i32
    %c0_i32_0 = arith.constant 0 : i32
    return %1, %c0_i32 : i32, i32
  }
  func.func @transform_1(%arg0: i32, %arg1: i32) -> (i32, i32) {
    %c1_i32 = arith.constant 1 : i32
    %0 = arith.muli %arg0, %c1_i32 : i32
    %1 = arith.addi %0, %arg1 : i32
    %c0_i32 = arith.constant 0 : i32
    %c0_i32_0 = arith.constant 0 : i32
    return %1, %c0_i32 : i32, i32
  }
  func.func @transform_2(%arg0: i32, %arg1: i32) -> (i32, i32, i32) {
    %c0_i32 = arith.constant 0 : i32
    %c0_i32_0 = arith.constant 0 : i32
    %c0_i32_1 = arith.constant 0 : i32
    return %arg0, %c0_i32, %c0_i32_0 : i32, i32, i32
  }
}

</mosaic_0001>

<bundles_post_ra>
// kernel: tpu_custom_call.1
= control target key start
LH: loop header
LB: loop body
LE: loop exit
PB: predicated region body
PF: predicated region fallthrough
CT: control target
= control target key end

     0   :  { %7 = vsyncpa [#allocation4], 0  ;;  %s352_s0 = inlined_call_operand.hbm [shape: f32[1,2048], index: 0, kind: input, shape index: {}]   ;;  %s353_s1 = inlined_call_operand.hbm [shape: f32[1,2048], index: 1, kind: input, shape index: {}]   ;;  %s354_s2 = inlined_call_operand.hbm [shape: f32[1,8,128], index: 2, kind: output, shape index: {}]  }
   0x1   :  { %8 = vsyncpa [#allocation7], 0 }
   0x2   :  { %9 = vsyncpa [#allocation5], 0  ;;  %s18_s11 = sshll.u32 %s352_s0, 4  ;;  %s309_s12 = smov [#allocation3]   ;;  %s19_s11 = int_to_ptr.hbm [resolvable:$true] %s18_s11 }
   0x3   :  { %s20_s13 = sshll.u32 %s309_s12, 4  ;;  %s32_s16 = sshll.u32 %s353_s1, 4  ;;  %s21_s13 = int_to_ptr.vmem [resolvable:$true] %s20_s13  ;;  %s33_s16 = int_to_ptr.hbm [resolvable:$true] %s32_s16 }
   0x4   :  { %23 = dma.hbm_to_vmem [thread:$0]  %s19_s11, 256, %s21_s13, [#allocation4]  }
   0x5   :  { %s310_s17 = smov [#allocation6]  }
   0x6   :  { %s34_s18 = sshll.u32 %s310_s17, 4  ;;  %s35_s18 = int_to_ptr.vmem [resolvable:$true] %s34_s18 }
   0x7   :  { %37 = dma.hbm_to_vmem [thread:$0]  %s33_s16, 256, %s35_s18, [#allocation7]  }
   0x8   :  { %303 = dma.done.wait [#allocation4], 256  }
   0x9   :  { %304 = vsyncadd [#allocation4], 4294967040 }
   0xa   :  { %305 = dma.done.wait [#allocation7], 256  }
   0xb   :  { %306 = vsyncadd [#allocation7], 4294967040  ;;  %v54_v0 = vld [vmem:[#allocation3] sm:$0xff]  ;;  %v55_v1 = vld [vmem:[#allocation3 + $0x8] sm:$0xff]  ;;  %vm157_vm6 = vcmask 1040384   ;;  %s311_s0 = smov [#allocation8]  }
   0xc   :  { %v64_v2 = vand.u32 2147483647, %v54_v0  ;;  %v65_v3 = vand.u32 2147483647, %v55_v1  ;;  %v94_v8 = vsub.f32 1.0, %v54_v0  ;;  %v56_v13 = vld [vmem:[#allocation6] sm:$0xff] }
   0xd   :  { %vm92_vm0 = vcmp.ne.f32.partialorder %v56_v13, 1.0  ;;  %vm100_vm1 = vcmp.ne.f32.partialorder %v56_v13, 0.0  ;;  %v58_v18 = vmax.f32 %v54_v0, 0.0  ;;  %v60_v19 = vmul.f32 %v56_v13, %v54_v0  ;;  %v57_v23 = vld [vmem:[#allocation6 + $0x8] sm:$0xff]  ;;  %s205_s1 = sshll.u32 %s311_s0, 4  ;;  %s207_s21 = sshll.u32 %s354_s2, 4  ;;  %s206_s1 = int_to_ptr.vmem [resolvable:$true] %s205_s1  ;;  %s208_s21 = int_to_ptr.hbm [resolvable:$true] %s207_s21 }
   0xe   :  { %v66_v4 = vsub.f32 0.0, %v64_v2  ;;  %v67_v5 = vsub.f32 0.0, %v65_v3  ;;  %v96_v15 = vmax.f32 %v94_v8, 0.0  ;;  %v102_v22 = vsel %vm100_vm1, %v54_v0, 0.0 }
   0xf   :  { %v95_v25 = vsub.f32 1.0, %v55_v1  ;;  %v62_v29 = vsub.f32 %v58_v18, %v60_v19  ;;  %v59_v32 = vmax.f32 %v55_v1, 0.0  ;;  %v61_v33 = vmul.f32 %v57_v23, %v55_v1 }
  0x10   :  { %v68_v6 = vmul.f32 1.442695, %v66_v4  ;;  %v70_v7 = vmul.f32 1.442695, %v67_v5  ;;  %v98_v21 = vsel %vm92_vm0, %v96_v15, 0.0  ;;  %vm93_vm4 = vcmp.ne.f32.partialorder %v57_v23, 1.0 }
  0x11   :  { %v104_v30 = vadd.f32 %v102_v22, %v98_v21  ;;  %v97_v37 = vmax.f32 %v95_v25, 0.0  ;;  %vm101_vm5 = vcmp.ne.f32.partialorder %v57_v23, 0.0  ;;  %v63_v41 = vsub.f32 %v59_v32, %v61_v33 }
  0x12   :  { %223 = vpow2.f32 %v68_v6  ;;  %v103_v44 = vsel %vm101_vm5, %v55_v1, 0.0 }
  0x13   :  { %225 = vpow2.f32 %v70_v7  ;;  %v108_v40 = vmul.f32 0.05, %v104_v30  ;;  %v99_v43 = vsel %vm93_vm4, %v97_v37, 0.0 }
  0x14   :  { %v105_v48 = vadd.f32 %v103_v44, %v99_v43 }
  0x16   :  { %v109_v54 = vmul.f32 0.05, %v105_v48 }
  0x18   :  { %v224_v9 = vpop.eup %223 }
  0x19   :  { %v226_v10 = vpop.eup %225  ;;  %v72_v11 = vadd.f32 1.0, %v224_v9  ;;  %v75_v12 = vmul.f32 -0.5, %v224_v9  ;;  %v78_v20 = vand.u32 2147483647, %v224_v9 }
  0x1a   :  { %v81_v14 = vadd.f32 1.0, %v226_v10  ;;  %v84_v16 = vmul.f32 -0.5, %v226_v10  ;;  %v87_v27 = vand.u32 2147483647, %v226_v10 }
  0x1b   :  { %227 = vlog2.f32 %v72_v11  ;;  %v76_v17 = vadd.f32 1.0, %v75_v12  ;;  %vm79_vm2 = vcmp.lt.f32.partialorder %v78_v20, 0.0004427343 }
  0x1c   :  { %229 = vlog2.f32 %v81_v14  ;;  %v85_v24 = vadd.f32 1.0, %v84_v16  ;;  %vm88_vm3 = vcmp.lt.f32.partialorder %v87_v27, 0.0004427343 }
  0x1d   :  { %v77_v26 = vmul.f32 %v224_v9, %v76_v17 }
  0x1e   :  { %v86_v36 = vmul.f32 %v226_v10, %v85_v24 }
  0x21   :  { %v228_v28 = vpop.eup %227 }
  0x22   :  { %v230_v31 = vpop.eup %229  ;;  %v74_v34 = vmul.f32 0.6931472, %v228_v28 }
  0x23   :  { %v83_v35 = vmul.f32 0.6931472, %v230_v31 }
  0x24   :  { %v80_v38 = vsel %vm79_vm2, %v77_v26, %v74_v34 }
  0x25   :  { %v90_v39 = vadd.f32 %v80_v38, %v62_v29  ;;  %v89_v42 = vsel %vm88_vm3, %v86_v36, %v83_v35 }
  0x26   :  { %v91_v47 = vadd.f32 %v89_v42, %v63_v41 }
  0x27   :  { %v106_v45 = vmul.f32 0.95, %v90_v39 }
  0x28   :  { %v107_v53 = vmul.f32 0.95, %v91_v47 }
  0x29   :  { %v110_v46 = vadd.f32 %v108_v40, %v106_v45 }
  0x2a   :  { %v111_v63 = vadd.f32 %v109_v54, %v107_v53 }
  0x2b   :  { %v125_v49 = vperm.slane %v110_v46, 0  ;;  %v126_v50 = vperm.slane %v110_v46, 1  ;;  %v127_v51 = vperm.slane %v110_v46, 2  ;;  %v128_v52 = vperm.slane %v110_v46, 3 }
  0x2c   :  { %v129_v55 = vperm.slane %v110_v46, 4  ;;  %v130_v60 = vperm.slane %v110_v46, 5  ;;  %v131_v0 = vperm.slane %v110_v46, 6  ;;  %v132_v3 = vperm.slane %v110_v46, 7 }
  0x2d   :  { %v158_v56 = vsel %vm157_vm6, %v125_v49, 0.0  ;;  %v159_v57 = vsel %vm157_vm6, %v126_v50, 0.0  ;;  %v161_v58 = vsel %vm157_vm6, %v127_v51, 0.0  ;;  %v163_v61 = vsel %vm157_vm6, %v128_v52, 0.0 }
  0x2e   :  { %v160_v59 = vadd.f32 %v159_v57, %v158_v56  ;;  %v165_v1 = vsel %vm157_vm6, %v129_v55, 0.0  ;;  %v167_v4 = vsel %vm157_vm6, %v130_v60, 0.0  ;;  %v133_v6 = vperm.slane %v111_v63, 0 }
  0x2f   :  { %v169_v7 = vsel %vm157_vm6, %v131_v0, 0.0  ;;  %v134_v9 = vperm.slane %v111_v63, 1  ;;  %v171_v10 = vsel %vm157_vm6, %v132_v3, 0.0  ;;  %v135_v12 = vperm.slane %v111_v63, 2 }
  0x30   :  { %v162_v62 = vadd.f32 %v161_v58, %v160_v59  ;;  %v173_v13 = vsel %vm157_vm6, %v133_v6, 0.0  ;;  %v136_v15 = vperm.slane %v111_v63, 3  ;;  %v137_v18 = vperm.slane %v111_v63, 4 }
  0x31   :  { %v175_v16 = vsel %vm157_vm6, %v134_v9, 0.0  ;;  %v177_v19 = vsel %vm157_vm6, %v135_v12, 0.0  ;;  %v138_v21 = vperm.slane %v111_v63, 5  ;;  %v139_v24 = vperm.slane %v111_v63, 6 }
  0x32   :  { %v164_v2 = vadd.f32 %v163_v61, %v162_v62  ;;  %v179_v22 = vsel %vm157_vm6, %v136_v15, 0.0  ;;  %v181_v25 = vsel %vm157_vm6, %v137_v18, 0.0  ;;  %v140_v27 = vperm.slane %v111_v63, 7 }
  0x33   :  { %v183_v28 = vsel %vm157_vm6, %v138_v21, 0.0  ;;  %v185_v30 = vsel %vm157_vm6, %v139_v24, 0.0 }
  0x34   :  { %v166_v5 = vadd.f32 %v165_v1, %v164_v2  ;;  %v187_v32 = vsel %vm157_vm6, %v140_v27, 0.0 }
  0x36   :  { %v168_v8 = vadd.f32 %v167_v4, %v166_v5 }
  0x38   :  { %v170_v11 = vadd.f32 %v169_v7, %v168_v8 }
  0x3a   :  { %v172_v14 = vadd.f32 %v171_v10, %v170_v11 }
  0x3c   :  { %v174_v17 = vadd.f32 %v173_v13, %v172_v14 }
  0x3e   :  { %v176_v20 = vadd.f32 %v175_v16, %v174_v17 }
  0x40   :  { %v178_v23 = vadd.f32 %v177_v19, %v176_v20 }
  0x42   :  { %v180_v26 = vadd.f32 %v179_v22, %v178_v23 }
  0x44   :  { %v182_v29 = vadd.f32 %v181_v25, %v180_v26 }
  0x46   :  { %v184_v31 = vadd.f32 %v183_v28, %v182_v29 }
  0x48   :  { %v186_v33 = vadd.f32 %v185_v30, %v184_v31 }
  0x4a   :  { %v188_v34 = vadd.f32 %v187_v32, %v186_v33 }
  0x4c   :  { %189 = vadd.xlane.f32.xlu0 %v188_v34 }
  0xbf   :  { %v190_v35 = vpop.xlane.xlu0 %189 }
  0xc0   :  { %v191_v36 = vrot.slane %v190_v35, 4 }
  0xc2   :  { %v192_v37 = vadd.f32 %v191_v36, %v190_v35 }
  0xc4   :  { %v193_v38 = vrot.slane %v192_v37, 2 }
  0xc6   :  { %v194_v39 = vadd.f32 %v193_v38, %v192_v37 }
  0xc8   :  { %v195_v40 = vrot.slane %v194_v39, 1 }
  0xca   :  { %v196_v41 = vadd.f32 %v195_v40, %v194_v39 }
  0xcc   :  { %218 = vpush %v196_v41 }
  0xfd   :  { %s219_s22 = spop %218 }
  0xfe   :  { %v198_v42 = vstv %s219_s22 }
  0xff   :  { %199 = vst [vmem:[#allocation8] sm:$0xff] %v198_v42 }
 0x100   :  { %210 = dma.vmem_to_hbm [thread:$0]  %s206_s1, 128, %s208_s21, [#allocation5]  }
 0x101   :  { %307 = dma.done.wait [#allocation5], 128  }
 0x102   :  { %308 = vsyncadd [#allocation5], 4294967168 }
 0x103   :  { %215 = vsyncpa [#allocation4], 1 }
 0x104   :  { %216 = vsyncpa [#allocation7], 1 }
 0x105   :  { %217 = vsyncpa [#allocation5], 1 }

</bundles_post_ra>
